<compile_context>
chip_gen: v7x
topology: tpu7x:2x2x1
jax: 0.10.0
libtpu: 0.0.40
codegen_flags: <defaults>
</compile_context>

<pallas_src>
import functools
import sys

import numpy as np

import jax
import jax.numpy as jnp
from jax import lax
from jax.experimental import pallas as pl
from jax.experimental.pallas import tpu as pltpu


# ----------------------------------------------------------------------------
# pltpu.roll direction probe (tiny one-off kernel; slice+concat fallback).
# ----------------------------------------------------------------------------
_ROLL_MODE = None


def _get_roll_mode():
    """Returns 'np' (pltpu.roll == jnp.roll), 'left', or 'slice' (fallback)."""
    global _ROLL_MODE
    if _ROLL_MODE is not None:
        return _ROLL_MODE
    mode = "slice"
    try:
        def probe(x_ref, o_ref):
            o_ref[...] = pltpu.roll(x_ref[...], 1, 1)

        x = jnp.tile(jnp.arange(128, dtype=jnp.float32)[None, :], (8, 1))
        y = np.asarray(jax.device_get(
            pl.pallas_call(
                probe,
                out_shape=jax.ShapeDtypeStruct((8, 128), jnp.float32))(x)))
        if y[0, 0] == 127.0 and y[0, 1] == 0.0:
            mode = "np"      # roll(x, s)[p] == x[(p - s) % n]
        elif y[0, 0] == 1.0 and y[0, 127] == 0.0:
            mode = "left"    # roll(x, s)[p] == x[(p + s) % n]
    except Exception:
        mode = "slice"
    if mode == "slice":
        # Loud (but non-fatal) warning: correct, just slower (extra VMEM copies).
        print("WARNING: pltpu.roll probe inconclusive; using slice+concat shifts.",
              file=sys.stderr)
    _ROLL_MODE = mode
    return mode


def _shift_left(x, amount, n, roll_mode):
    """out[:, p] = x[:, (p + amount) % n] for a 2-D (C, n) array."""
    a = amount % n
    if a == 0:
        return x
    if roll_mode == "np":
        return pltpu.roll(x, (n - a) % n, 1)
    if roll_mode == "left":
        return pltpu.roll(x, a, 1)
    return jnp.concatenate([x[:, a:], x[:, :a]], axis=1)


def _tap_masks(H, W, nsp_pad):
    """(8, nsp_pad) f32 {0,1} masks for the 8 off-center 3x3 taps (single sublane tile)."""
    hh, ww = np.meshgrid(np.arange(H), np.arange(W), indexing="ij")
    hh = hh.reshape(-1)
    ww = ww.reshape(-1)
    m = np.zeros((8, nsp_pad), np.float32)
    j = 0
    for ky in range(3):
        for kx in range(3):
            dy, dx = ky - 1, kx - 1
            if dy == 0 and dx == 0:
                continue
            valid = ((hh + dy >= 0) & (hh + dy < H) &
                     (ww + dx >= 0) & (ww + dx < W))
            m[j, :H * W] = valid.astype(np.float32)
            j += 1
    return jnp.asarray(m)


# ----------------------------------------------------------------------------
# Fused RRDB kernel: 3 dense blocks (15 convs) + LeakyReLUs + residuals, per image.
# ----------------------------------------------------------------------------
def _make_rrdb_kernel(num_feat, num_grow_ch, H, W, nsp, compute_dtype, roll_mode):
    taps = [(ky - 1, kx - 1) for ky in range(3) for kx in range(3)]

    def kernel(x_ref, m_ref, w1, w2, w3, w4, w5, b1, b2, b3, b4, b5,
               o_ref, cols_ref):
        w_refs = [w1, w2, w3, w4, w5]          # (3, Cout_i, K_i) compute_dtype
        b_refs = [b1, b2, b3, b4, b5]          # (3, Cout_i, 1)   f32
        masks = m_ref[...]                     # (8, nsp)         f32
        x0 = x_ref[0]                          # (Cf, nsp)        f32

        def im2col_store(src, row_off, cs):
            # src: (cs, nsp) f32 -> store 9 tap pieces (tap-major, then channel) into
            # cols_ref rows [row_off, row_off + 9*cs). Zero padding is applied via the
            # boundary masks; only the write into cols is cast to compute_dtype.
            j = 0
            for t, (dy, dx) in enumerate(taps):
                if dy == 0 and dx == 0:
                    piece = src
                else:
                    piece = _shift_left(src, dy * W + dx, nsp, roll_mode)
                    piece = piece * masks[j:j + 1, :]
                    j += 1
                cols_ref[row_off + t * cs: row_off + (t + 1) * cs, :] = (
                    piece.astype(cols_ref.dtype))

        cur = x0
        for blk in range(3):                   # rdb1, rdb2, rdb3 (fully unrolled)
            im2col_store(cur, 0, num_feat)
            rows = 9 * num_feat
            for i in range(5):
                # Single MXU dot per conv: (Cout, K_i) x (K_i, nsp), f32 accumulation.
                acc = jnp.dot(w_refs[i][blk], cols_ref[0:rows, :],
                              preferred_element_type=jnp.float32)
                acc = acc + b_refs[i][blk]                     # bias (Cout, 1)
                if i < 4:
                    act = jnp.maximum(acc, 0.2 * acc)          # LeakyReLU(0.2)
                    im2col_store(act, rows, num_grow_ch)
                    rows += 9 * num_grow_ch
                else:
                    cur = acc * 0.2 + cur                      # dense-block residual
        o_ref[0] = (cur * 0.2 + x0).astype(o_ref.dtype)        # outer RRDB residual

    return kernel


def _prep_rrdb_params(params, num_feat, num_grow_ch, compute_dtype):
    """Pack weights into 5 slabs (3, Cout_i, 9*Cin_total_i) and 5 bias slabs (3, Cout_i, 1).

    K ordering per conv: source-major, then (tap, channel) within each source — matching
    the in-kernel cols layout — so one contiguous dot per conv replaces per-source dots.
    """
    w_slabs, b_slabs = [], []
    for i in range(5):
        cout = num_grow_ch if i < 4 else num_feat
        per_block_w, per_block_b = [], []
        for blk in range(3):
            w = params[blk][f"conv{i + 1}"]["w"]     # (3, 3, Cin_total, Cout)  HWIO
            b = params[blk][f"conv{i + 1}"]["b"]     # (Cout,)
            chunks, c0 = [], 0
            for cs in [num_feat] + [num_grow_ch] * i:
                chunk = w[:, :, c0:c0 + cs, :]                  # (3, 3, Cs, Cout)
                chunk = jnp.transpose(chunk, (3, 0, 1, 2))      # (Cout, 3, 3, Cs)
                chunks.append(chunk.reshape(cout, 9 * cs))
                c0 += cs
            per_block_w.append(jnp.concatenate(chunks, axis=1))  # (Cout, 9*Cin_total)
            per_block_b.append(b.reshape(cout, 1))
        w_slabs.append(jnp.stack(per_block_w, 0).astype(compute_dtype))
        b_slabs.append(jnp.stack(per_block_b, 0).astype(jnp.float32))
    return w_slabs, b_slabs


def _vmem_bytes_estimate(cf, g, nsp, compute_dtype):
    """Rough per-grid-step VMEM working-set estimate (with headroom)."""
    cd = jnp.dtype(compute_dtype).itemsize
    ctot = cf + 4 * g
    act_io = 4 * cf * nsp * 4                       # x + out blocks, double-buffered f32
    cols = 9 * ctot * nsp * cd                      # persistent im2col scratch
    wbytes = 0
    for i in range(5):
        cout = g if i < 4 else cf
        kpad = ((9 * (cf + i * g) + 127) // 128) * 128
        wbytes += 3 * cout * kpad * cd + 3 * cout * 128 * 4
    live = 6 * ctot * nsp * 4                       # in-kernel f32 temporaries (rough)
    return act_io + cols + 2 * wbytes + live + (4 << 20)


def _vmem_cap_bytes():
    try:
        return int(pltpu.get_tpu_info().vmem_capacity_bytes)
    except Exception:
        return 64 << 20                              # conservative (v7x physical VMEM)


def rrdb_lp_forward(x_nchw, params, *, compute_dtype=jnp.bfloat16):
    """RRDB_LP forward (padding_mode='zeros'). x: (B, num_feat, H, W) NCHW."""
    B, cf, H, W = x_nchw.shape
    g = params[0]["conv1"]["w"].shape[-1]
    nsp = H * W
    nsp_pad = ((nsp + 127) // 128) * 128             # lane-dense last dim

    x_flat = x_nchw.reshape(B, cf, nsp).astype(jnp.float32)
    if nsp_pad != nsp:
        x_flat = jnp.pad(x_flat, ((0, 0), (0, 0), (0, nsp_pad - nsp)))

    masks = _tap_masks(H, W, nsp_pad)
    w_slabs, b_slabs = _prep_rrdb_params(params, cf, g, compute_dtype)
    kernel = _make_rrdb_kernel(cf, g, H, W, nsp_pad, compute_dtype, _get_roll_mode())

    act_spec = pl.BlockSpec((1, cf, nsp_pad), lambda b: (b, 0, 0))
    full = lambda a: pl.BlockSpec(a.shape, lambda b: (0,) * a.ndim)

    inputs = [x_flat, masks, *w_slabs, *b_slabs]
    in_specs = [act_spec, full(masks)] + [full(w) for w in w_slabs] \
               + [full(b) for b in b_slabs]

    ckwargs = dict(dimension_semantics=("parallel",))
    est = _vmem_bytes_estimate(cf, g, nsp_pad, compute_dtype)
    if est > (16 << 20):
        # Raise the scoped-VMEM limit only when the working set needs it (v5e default
        # is 16 MiB).  TODO(synk): spatial tiling with halo once est exceeds physical.
        ckwargs["vmem_limit_bytes"] = int(min(est, max(_vmem_cap_bytes() - (4 << 20),
                                                       24 << 20)))

    out = pl.pallas_call(
        kernel,
        grid=(B,),
        out_shape=jax.ShapeDtypeStruct((B, cf, nsp_pad), jnp.float32),
        in_specs=in_specs,
        out_specs=act_spec,
        scratch_shapes=[pltpu.VMEM((9 * (cf + 4 * g), nsp_pad), compute_dtype)],
        compiler_params=pltpu.CompilerParams(**ckwargs),
    )(*inputs)

    return out[:, :, :nsp].reshape(B, cf, H, W)


# ----------------------------------------------------------------------------
# Parameters (mimics default_init_weights with scale=0.1; biases made non-zero
# here only to exercise the bias path — PyTorch's init would zero them).
# ----------------------------------------------------------------------------
def _make_conv_params(key, ch_in, ch_out, scale=0.1):
    kw, kb = jax.random.split(key)
    std = (2.0 / (ch_in * 9)) ** 0.5
    w = jax.random.normal(kw, (3, 3, ch_in, ch_out), jnp.float32) * std * scale
    b = jax.random.normal(kb, (ch_out,), jnp.float32) * 0.01
    return {"w": w, "b": b}


def make_rrdb_lp_params(key, num_feat, num_grow_ch):
    params = []
    for _ in range(3):  # rdb1, rdb2, rdb3
        rdb = {}
        for i in range(5):
            key, sub = jax.random.split(key)
            ch_in = num_feat + i * num_grow_ch
            ch_out = num_grow_ch if i < 4 else num_feat
            rdb[f"conv{i + 1}"] = _make_conv_params(sub, ch_in, ch_out)
        params.append(rdb)
    return params


# ----------------------------------------------------------------------------
# Plain-JAX reference (matches the PyTorch module) for in-script validation.
# ----------------------------------------------------------------------------
def _conv3x3_ref(x, w, b):
    out = lax.conv_general_dilated(
        x, w, (1, 1), ((1, 1), (1, 1)),
        dimension_numbers=("NCHW", "HWIO", "NCHW"),
        precision=lax.Precision.HIGHEST,
        preferred_element_type=jnp.float32)
    return out + b.reshape(1, -1, 1, 1)


def _rdb_ref(x, p):
    lrelu = lambda t: jnp.where(t >= 0, t, 0.2 * t)
    x1 = lrelu(_conv3x3_ref(x, p["conv1"]["w"], p["conv1"]["b"]))
    x2 = lrelu(_conv3x3_ref(jnp.concatenate([x, x1], 1), p["conv2"]["w"], p["conv2"]["b"]))
    x3 = lrelu(_conv3x3_ref(jnp.concatenate([x, x1, x2], 1), p["conv3"]["w"], p["conv3"]["b"]))
    x4 = lrelu(_conv3x3_ref(jnp.concatenate([x, x1, x2, x3], 1), p["conv4"]["w"], p["conv4"]["b"]))
    x5 = _conv3x3_ref(jnp.concatenate([x, x1, x2, x3, x4], 1), p["conv5"]["w"], p["conv5"]["b"])
    return x5 * 0.2 + x


def rrdb_lp_reference(x, params):
    out = _rdb_ref(x, params[0])
    out = _rdb_ref(out, params[1])
    out = _rdb_ref(out, params[2])
    return out * 0.2 + x


if __name__ == "__main__":
    num_feat, num_grow_ch = 32, 16
    B, H, W = 2, 16, 16

    key = jax.random.PRNGKey(0)
    key_x, key_p = jax.random.split(key)
    x = jax.random.normal(key_x, (B, num_feat, H, W), jnp.float32)  # NCHW
    params = make_rrdb_lp_params(key_p, num_feat, num_grow_ch)

    _get_roll_mode()  # probe pltpu.roll direction once, outside jit

    ref = jax.block_until_ready(jax.jit(rrdb_lp_reference)(x, params))

    # f32 MXU operands (exact semantics of the PyTorch module).
    fwd_f32 = jax.jit(functools.partial(rrdb_lp_forward, compute_dtype=jnp.float32))
    out_f32 = jax.block_until_ready(fwd_f32(x, params))
    assert out_f32.shape == (B, num_feat, H, W), out_f32.shape
    assert bool(jnp.all(jnp.isfinite(out_f32)))
    err_f32 = float(jnp.max(jnp.abs(out_f32 - ref)))
    assert err_f32 < 5e-3, f"f32 kernel mismatch vs reference: {err_f32}"

    # Production default: bf16 MXU operands / f32 accumulation & elementwise.
    fwd_bf16 = jax.jit(rrdb_lp_forward)
    out_bf16 = jax.block_until_ready(fwd_bf16(x, params))
    assert bool(jnp.all(jnp.isfinite(out_bf16)))
    err_bf16 = float(jnp.max(jnp.abs(out_bf16 - ref)))
    assert err_bf16 < 5e-2, f"bf16 kernel mismatch vs reference: {err_bf16}"

    print("KERNEL_OK")
</pallas_src>

<mosaic_0001>
module attributes {stable_mosaic.version = 11 : i64} {
  func.func @probe(%arg0: memref<8x128xf32, #tpu.memory_space<vmem>>, %arg1: memref<8x128xf32, #tpu.memory_space<vmem>>) attributes {dimension_semantics = [], scalar_prefetch = 0 : i64, scratch_operands = 0 : i64, tpu.core_type = #tpu.core_type<tc>} {
    %c0 = arith.constant 0 : index
    %c0_0 = arith.constant 0 : index
    %0 = vector.load %arg0[%c0, %c0_0] : memref<8x128xf32, #tpu.memory_space<vmem>>, vector<8x128xf32>
    %c1_i32 = arith.constant 1 : i32
    %1 = tpu.dynamic_rotate %0 by %c1_i32 dim 1 : vector<8x128xf32>, i32 -> vector<8x128xf32>
    %c0_1 = arith.constant 0 : index
    %c0_2 = arith.constant 0 : index
    %2 = vector.load %arg1[%c0_1, %c0_2] : memref<8x128xf32, #tpu.memory_space<vmem>>, vector<8x128xf32>
    tpu.vector_store %arg1[%c0_1, %c0_2], %1 {strides = array<i32>} : memref<8x128xf32, #tpu.memory_space<vmem>>, vector<8x128xf32>,
    return
  }
}

</mosaic_0001>

<bundles_post_ra>
// kernel: tpu_custom_call.1
= control target key start
LH: loop header
LB: loop body
LE: loop exit
PB: predicated region body
PF: predicated region fallthrough
CT: control target
= control target key end

     0   :  { %6 = vsyncpa [#allocation3], 0  ;;  %s128_s0 = inlined_call_operand.hbm [shape: f32[8,128], index: 0, kind: input, shape index: {}]   ;;  %s129_s1 = inlined_call_operand.hbm [shape: f32[8,128], index: 1, kind: output, shape index: {}]  }
   0x1   :  { %7 = vsyncpa [#allocation4], 0  ;;  %s91_s6 = smov [#allocation2]   ;;  %s43_s10 = scalar_lea.hbm %s128_s0, 128 }
   0x2   :  { %s14_s7 = sshll.u32 %s91_s6, 4  ;;  %p44_p0 = scmp.ne.s32.totalorder %s128_s0, %s43_s10  ;;  %s15_s7 = int_to_ptr.vmem [resolvable:$true] %s14_s7 }
   0x3   :  { %p47_p1 = scmp.lt.u32.totalorder %s43_s10, %s128_s0 }
   0x5   :  { %p49_p2 = pnand %p47_p1, %p44_p0 }
   0x7   :  { %52 = shalt.err (!%p49_p2)
}
   0x8   :  { %s53_s15 = scalar_lea.vmem %s15_s7, 128  ;;  %p58_p4 = scmp.lt.s32.totalorder %s15_s7, %s15_s7 }
   0x9   :  { %p54_p3 = scmp.ne.s32.totalorder %s15_s7, %s53_s15  ;;  %p59_p5 = scmp.lt.s32.totalorder %s53_s15, %s53_s15 }
   0xb   :  { %p60_p6 = por %p59_p5, %p58_p4 }
   0xd   :  { %p61_p7 = pnand %p60_p6, %p54_p3 }
   0xf   :  { %64 = shalt.err (!%p61_p7)
}
  0x10   :  { %17 = dma.hbm_to_vmem [thread:$0]  %s128_s0, 128, %s15_s7, [#allocation3]  }
  0x11   :  { %87 = dma.done.wait [#allocation3], 128  }
  0x12   :  { %88 = vsyncadd [#allocation3], 4294967168  ;;  %v21_v0 = vld [vmem:[#allocation2] sm:$0xff]  ;;  %s92_s18 = smov 1   ;;  %s93_s19 = smov [#allocation5]  }
  0x13   :  { %22 = vrot.lane.b32.xlu0 %v21_v0, %s92_s18  ;;  %s31_s20 = sshll.u32 %s93_s19, 4  ;;  %s32_s20 = int_to_ptr.vmem [resolvable:$true] %s31_s20 }
  0x14   :  { %s65_s21 = scalar_lea.vmem %s32_s20, 128  ;;  %p70_p9 = scmp.lt.s32.totalorder %s32_s20, %s32_s20 }
  0x15   :  { %p66_p8 = scmp.ne.s32.totalorder %s32_s20, %s65_s21  ;;  %p71_p10 = scmp.lt.s32.totalorder %s65_s21, %s65_s21 }
  0x17   :  { %p72_p11 = por %p71_p10, %p70_p9 }
  0x19   :  { %p73_p12 = pnand %p72_p11, %p66_p8 }
  0x85   :  { %v23_v1 = vpop.permute.xlu0 %22 }
  0x86   :  { %24 = vst [vmem:[#allocation5] sm:$0xff] %v23_v1 }
  0x87   :  { %76 = shalt.err (!%p73_p12)
}
  0x88   :  { %s77_s0 = scalar_lea.hbm %s129_s1, 128 }
  0x89   :  { %p78_p13 = scmp.ne.s32.totalorder %s129_s1, %s77_s0  ;;  %p81_p0 = scmp.lt.u32.totalorder %s77_s0, %s129_s1 }
  0x8b   :  { %p83_p1 = pnand %p81_p0, %p78_p13 }
  0x8d   :  { %86 = shalt.err (!%p83_p1)
}
  0x8e   :  { %34 = dma.vmem_to_hbm [thread:$0]  %s32_s20, 128, %s129_s1, [#allocation4]  }
  0x8f   :  { %89 = dma.done.wait [#allocation4], 128  }
  0x90   :  { %90 = vsyncadd [#allocation4], 4294967168 }
  0x91   :  { %38 = vsyncpa [#allocation3], 1 }
  0x92   :  { %39 = vsyncpa [#allocation4], 1 }

</bundles_post_ra>
